<compile_context>
chip_gen: v7x
topology: tpu7x:2x2x1
jax: 0.10.0
libtpu: 0.0.40
codegen_flags: <defaults>
</compile_context>

<pallas_src>
import functools

import jax
import jax.numpy as jnp
import numpy as np
from jax.experimental import pallas as pl
from jax.experimental.pallas import tpu as pltpu


def _pick_tile(n, target, align):
    """Largest tile <= target that divides n and is a multiple of `align`.
    Falls back to the full extent (a block equal to the full dim is always legal)."""
    if n <= target:
        return n
    t = (target // align) * align
    while t >= align:
        if n % t == 0:
            return t
        t -= align
    return n


def _pairwise_norm_kernel(fq_ref, fk_ref, proj_ref, rproj_ref, kk_ref,
                          rowssq_ref, u_scr, uu_scr, *, seq_len, needs_mask):
    """Pass A: per-row partial sum of delta^2, accumulated over the key-tile grid axis.

    fq_ref:     (1, tq, F)  query feature tile (x rows if fused, scores rows otherwise)
    fk_ref:     (1, tk, F)  key feature tile
    proj_ref:   (F, Cp)     W^T zero-padded to Cp lanes (or Cp-padded identity)
    rproj_ref:  (1, Cp)     W @ r, padded
    kk_ref:     (1, 1, tk)  precomputed key row norms ||s_m||^2
    rowssq_ref: (1, tq, 1)  sum_m delta[l,m]^2, partial over key tiles
    u_scr:      (tq, Cp)    scratch: u = s_q + W r   (computed once per (b, qi))
    uu_scr:     (tq, 1)     scratch: ||u_l||^2       (computed once per (b, qi))
    """
    ki = pl.program_id(2)

    @pl.when(ki == 0)
    def _():
        sq = jnp.dot(fq_ref[0], proj_ref[...], preferred_element_type=jnp.float32)
        u = sq + rproj_ref[...]                                   # (tq, Cp)
        u_scr[...] = u
        uu_scr[...] = jnp.sum(u * u, axis=-1, keepdims=True)      # (tq, 1)
        rowssq_ref[...] = jnp.zeros_like(rowssq_ref)

    # Key-side projection (K = F matmul; negligible vs. DMA) + cross term on the MXU.
    sk = jnp.dot(fk_ref[0], proj_ref[...], preferred_element_type=jnp.float32)  # (tk, Cp)
    cross = jax.lax.dot_general(u_scr[...], sk, (((1,), (1,)), ((), ())),
                                preferred_element_type=jnp.float32)             # (tq, tk)

    # ||u_l - s_m||^2, clamped against tiny negative cancellation residue.
    d = jnp.maximum(uu_scr[...] + kk_ref[0] - 2.0 * cross, 0.0)                 # (tq, tk)

    if needs_mask:
        # Exclude padded key columns (m >= L) from the Frobenius-norm accumulation.
        tk = d.shape[-1]
        col = jax.lax.broadcasted_iota(jnp.int32, (1, tk), 1) + ki * tk
        d = jnp.where(col < seq_len, d, 0.0)

    rowssq_ref[0] += jnp.sum(d * d, axis=-1, keepdims=True)


def _pairwise_scale_kernel(inv_ref, fq_ref, fk_ref, proj_ref, rproj_ref, kk_ref,
                           out_ref, u_scr, uu_scr):
    """Pass B: recompute the pairwise distances and write the already-scaled output.

    inv_ref: (1, 1) SMEM scalar = rsqrt(sum(delta^2)); out_ref: (1, tq, tk).
    """
    ki = pl.program_id(2)

    @pl.when(ki == 0)
    def _():
        sq = jnp.dot(fq_ref[0], proj_ref[...], preferred_element_type=jnp.float32)
        u = sq + rproj_ref[...]
        u_scr[...] = u
        uu_scr[...] = jnp.sum(u * u, axis=-1, keepdims=True)

    sk = jnp.dot(fk_ref[0], proj_ref[...], preferred_element_type=jnp.float32)
    cross = jax.lax.dot_general(u_scr[...], sk, (((1,), (1,)), ((), ())),
                                preferred_element_type=jnp.float32)
    d = jnp.maximum(uu_scr[...] + kk_ref[0] - 2.0 * cross, 0.0)
    out_ref[0] = (d * inv_ref[0, 0]).astype(out_ref.dtype)


def kernel_probe_forward(x, w, r):
    """KernelProbe.forward.

    x: (B, L, H) float32   activations (BLH)
    w: (C, H)   float32    lin_proj.weight (nn.Linear(H, C, bias=False))
    r: (H,)     float32    offset parameter
    returns: (B, L, L) float32
    """
    B, L, H = x.shape
    C = w.shape[0]
    x = x.astype(jnp.float32)
    w = w.astype(jnp.float32)
    r = r.astype(jnp.float32)

    # Inner dim padded to full 128 lanes (zeros contribute 0 to every dot / sum-of-squares).
    Cp = 128 * max(1, -(-C // 128))

    # Tiny wrapper-side precompute: projected offset, and key row norms ||s_m||^2
    # (hoists per-step sk*sk + M=1 matmul out of the kernels).
    rproj = jnp.zeros((1, Cp), jnp.float32).at[0, :C].set(r @ w.T)
    scores_xla = x @ w.T                                  # (B, L, C) — tiny (C small)
    kk = jnp.sum(scores_xla * scores_xla, axis=-1)        # (B, L)

    if H <= Cp:
        # Fused path: projection happens inside the pairwise kernels (K = H matmul).
        feat, F = x, H
        proj = jnp.zeros((H, Cp), jnp.float32).at[:, :C].set(w.T)
    else:
        # TODO(synk): projection stays in XLA for H > Cp; it is memory-bound on reading
        # x either way.  Kernels consume the un-padded (B, L, C) scores; the in-kernel
        # identity matmul zero-pads them to Cp lanes for the K=Cp cross matmul.
        feat, F = scores_xla, C
        proj = jnp.zeros((C, Cp), jnp.float32).at[:, :C].set(jnp.eye(C, dtype=jnp.float32))

    # ---- Safe L padding + bounded tiles (multiple of 8 / 128; tiles <= 1024 so the
    # working set stays well under v7x's 64 MiB VMEM). -------------------------------
    if L <= 1024:
        Lp = max(8, ((L + 7) // 8) * 8)
        tq = tk = Lp                                # full-extent blocks (always legal)
    else:
        Lp = ((L + 127) // 128) * 128
        tq = _pick_tile(Lp, 1024, 128)
        tk = _pick_tile(Lp, 1024, 128)
    nq, nk = Lp // tq, Lp // tk
    needs_mask = (Lp != L)

    if needs_mask:
        feat = jnp.zeros((B, Lp, F), jnp.float32).at[:, :L, :].set(feat)
        kk = jnp.zeros((B, Lp), jnp.float32).at[:, :L].set(kk)
    kk = kk.reshape(B, 1, Lp)

    feat_q_spec = pl.BlockSpec((1, tq, F), lambda b, qi, ki: (b, qi, 0))
    feat_k_spec = pl.BlockSpec((1, tk, F), lambda b, qi, ki: (b, ki, 0))
    proj_spec = pl.BlockSpec((F, Cp), lambda b, qi, ki: (0, 0))
    rproj_spec = pl.BlockSpec((1, Cp), lambda b, qi, ki: (0, 0))
    kk_spec = pl.BlockSpec((1, 1, tk), lambda b, qi, ki: (b, 0, ki))
    scratch = [pltpu.VMEM((tq, Cp), jnp.float32),   # u = s_q + W r
               pltpu.VMEM((tq, 1), jnp.float32)]    # ||u||^2

    # ---- Pass A: per-row partial sum-of-squares of delta (no delta written to HBM). --
    rowssq = pl.pallas_call(
        functools.partial(_pairwise_norm_kernel, seq_len=L, needs_mask=needs_mask),
        out_shape=jax.ShapeDtypeStruct((B, Lp, 1), jnp.float32),
        grid_spec=pltpu.PrefetchScalarGridSpec(
            num_scalar_prefetch=0,
            grid=(B, nq, nk),
            in_specs=[feat_q_spec, feat_k_spec, proj_spec, rproj_spec, kk_spec],
            out_specs=pl.BlockSpec((1, tq, 1), lambda b, qi, ki: (b, qi, 0)),
            scratch_shapes=scratch,
        ),
        compiler_params=pltpu.CompilerParams(
            # key-tile axis is the reduction axis (and the scratch-hoist axis) -> arbitrary.
            dimension_semantics=("parallel", "parallel", "arbitrary"),
            vmem_limit_bytes=48 * 1024 * 1024,
        ),
    )(feat, feat, proj, rproj, kk)

    # ---- Global Frobenius norm: tiny XLA reduce (padded rows excluded) + rsqrt. ------
    inv = jax.lax.rsqrt(jnp.sum(rowssq[:, :L, :]))   # 0-norm -> inf (matches torch)
    inv2d = inv.reshape(1, 1)

    # ---- Pass B: recompute pairwise distances, write the scaled output directly. -----
    out_p = pl.pallas_call(
        _pairwise_scale_kernel,
        out_shape=jax.ShapeDtypeStruct((B, Lp, Lp), jnp.float32),
        grid_spec=pltpu.PrefetchScalarGridSpec(
            num_scalar_prefetch=0,
            grid=(B, nq, nk),
            in_specs=[pl.BlockSpec(memory_space=pltpu.MemorySpace.SMEM),  # inv scalar
                      feat_q_spec, feat_k_spec, proj_spec, rproj_spec, kk_spec],
            out_specs=pl.BlockSpec((1, tq, tk), lambda b, qi, ki: (b, qi, ki)),
            scratch_shapes=scratch,
        ),
        compiler_params=pltpu.CompilerParams(
            # ki must run sequentially per (b, qi) for the u/uu scratch hoist.
            dimension_semantics=("parallel", "parallel", "arbitrary"),
            vmem_limit_bytes=48 * 1024 * 1024,
        ),
    )(inv2d, feat, feat, proj, rproj, kk)

    return out_p[:, :L, :L] if needs_mask else out_p


if __name__ == "__main__":
    # Small shapes consistent with the module: B=2, L=8, outer_hidden=32, inner_hidden=2.
    B, L, H, C = 2, 8, 32, 2

    key = jax.random.PRNGKey(0)
    kx, kw, kr = jax.random.split(key, 3)
    x = jax.random.normal(kx, (B, L, H), jnp.float32)
    # Deterministic synthetic parameters (shapes from KernelProbe.__init__).
    # Torch init for `r` is zeros; use small nonzero values to exercise the offset path.
    w = jax.random.normal(kw, (C, H), jnp.float32) / jnp.sqrt(jnp.float32(H))
    r = jax.random.normal(kr, (H,), jnp.float32) * 0.02

    out = kernel_probe_forward(x, w, r)
    out = jax.block_until_ready(out)

    # Pure-numpy reference smoke check (direct, un-expanded formula).
    xn, wn, rn = np.asarray(x), np.asarray(w), np.asarray(r)
    scores = xn @ wn.T                         # (B, L, C)
    rp = rn @ wn.T                             # (C,)
    d = scores[:, :, None, :] - scores[:, None, :, :] + rp[None, None, None, :]
    delta = (d ** 2).sum(-1)                   # (B, L, L)
    ref = delta / np.linalg.norm(delta)
    np.testing.assert_allclose(np.asarray(out), ref, rtol=5e-2, atol=5e-3)

    print("KERNEL_OK")
</pallas_src>

<mosaic_0001>
module attributes {stable_mosaic.version = 11 : i64} {
  func.func @_pairwise_norm_kernel(%arg0: i32, %arg1: i32, %arg2: i32, %arg3: memref<1x8x32xf32, #tpu.memory_space<vmem>>, %arg4: memref<1x8x32xf32, #tpu.memory_space<vmem>>, %arg5: memref<32x128xf32, #tpu.memory_space<vmem>>, %arg6: memref<1x128xf32, #tpu.memory_space<vmem>>, %arg7: memref<1x1x8xf32, #tpu.memory_space<vmem>>, %arg8: memref<1x8x1xf32, #tpu.memory_space<vmem>>, %arg9: memref<8x128xf32, #tpu.memory_space<vmem>>, %arg10: memref<8x1xf32, #tpu.memory_space<vmem>>) attributes {dimension_semantics = [#tpu.dimension_semantics<parallel>, #tpu.dimension_semantics<parallel>, #tpu.dimension_semantics<arbitrary>], iteration_bounds = array<i64: 2, 1, 1>, scalar_prefetch = 0 : i64, scratch_operands = 2 : i64, tpu.core_type = #tpu.core_type<tc>, window_params = [{transform_indices = @transform_0, window_bounds = array<i64: 1, 8, 32>}, {transform_indices = @transform_1, window_bounds = array<i64: 1, 8, 32>}, {pipeline_mode = #tpu.pipeline_mode<synchronous>, transform_indices = @transform_2, window_bounds = array<i64: 32, 128>}, {pipeline_mode = #tpu.pipeline_mode<synchronous>, transform_indices = @transform_3, window_bounds = array<i64: 1, 128>}, {transform_indices = @transform_4, window_bounds = array<i64: 1, 1, 8>}, {transform_indices = @transform_5, window_bounds = array<i64: 1, 8, 1>}]} {
    %c0_i32 = arith.constant 0 : i32
    %0 = arith.cmpi eq, %arg2, %c0_i32 : i32
    %1 = arith.extui %0 : i1 to i32
    %c0_i32_0 = arith.constant 0 : i32
    %2 = arith.cmpi ne, %1, %c0_i32_0 : i32
    scf.if %2 {
      %c0_22 = arith.constant 0 : index
      %c0_23 = arith.constant 0 : index
      %c0_24 = arith.constant 0 : index
      %29 = vector.load %arg3[%c0_22, %c0_23, %c0_24] : memref<1x8x32xf32, #tpu.memory_space<vmem>>, vector<1x8x32xf32>
      %30 = vector.shape_cast %29 : vector<1x8x32xf32> to vector<8x32xf32>
      %c0_25 = arith.constant 0 : index
      %c0_26 = arith.constant 0 : index
      %31 = vector.load %arg5[%c0_25, %c0_26] : memref<32x128xf32, #tpu.memory_space<vmem>>, vector<32x128xf32>
      %cst_27 = arith.constant dense<0.000000e+00> : vector<8x128xf32>
      %32 = tpu.matmul %30, %31, %cst_27 {dimension_numbers = #tpu.dot_dimension_numbers<[1], [0], [0], [1], [0, 0, 1, 1], [], []>} : vector<8x32xf32>, vector<32x128xf32>, vector<8x128xf32> -> vector<8x128xf32>
      %c0_28 = arith.constant 0 : index
      %c0_29 = arith.constant 0 : index
      %33 = vector.load %arg6[%c0_28, %c0_29] : memref<1x128xf32, #tpu.memory_space<vmem>>, vector<1x128xf32>
      %34 = vector.broadcast %33 : vector<1x128xf32> to vector<8x128xf32>
      %35 = arith.addf %32, %34 : vector<8x128xf32>
      %c0_30 = arith.constant 0 : index
      %c0_31 = arith.constant 0 : index
      %36 = vector.load %arg9[%c0_30, %c0_31] : memref<8x128xf32, #tpu.memory_space<vmem>>, vector<8x128xf32>
      tpu.vector_store %arg9[%c0_30, %c0_31], %35 {strides = array<i32>} : memref<8x128xf32, #tpu.memory_space<vmem>>, vector<8x128xf32>,
      %37 = arith.mulf %35, %35 : vector<8x128xf32>
      %cst_32 = arith.constant dense<0.000000e+00> : vector<8xf32>
      %38 = vector.multi_reduction <add>, %37, %cst_32 [1] : vector<8x128xf32> to vector<8xf32>
      %39 = vector.shape_cast %38 : vector<8xf32> to vector<8x1xf32>
      %c0_33 = arith.constant 0 : index
      %c0_34 = arith.constant 0 : index
      %40 = vector.load %arg10[%c0_33, %c0_34] : memref<8x1xf32, #tpu.memory_space<vmem>>, vector<8x1xf32>
      tpu.vector_store %arg10[%c0_33, %c0_34], %39 {strides = array<i32>} : memref<8x1xf32, #tpu.memory_space<vmem>>, vector<8x1xf32>,
      %cst_35 = arith.constant 0.000000e+00 : f32
      %41 = vector.broadcast %cst_35 : f32 to vector<1x8x1xf32>
      %c0_36 = arith.constant 0 : index
      %c0_37 = arith.constant 0 : index
      %c0_38 = arith.constant 0 : index
      %42 = vector.load %arg8[%c0_36, %c0_37, %c0_38] : memref<1x8x1xf32, #tpu.memory_space<vmem>>, vector<1x8x1xf32>
      tpu.vector_store %arg8[%c0_36, %c0_37, %c0_38], %41 {strides = array<i32>} : memref<1x8x1xf32, #tpu.memory_space<vmem>>, vector<1x8x1xf32>,
    } else {
    }
    %c0 = arith.constant 0 : index
    %c0_1 = arith.constant 0 : index
    %c0_2 = arith.constant 0 : index
    %3 = vector.load %arg4[%c0, %c0_1, %c0_2] : memref<1x8x32xf32, #tpu.memory_space<vmem>>, vector<1x8x32xf32>
    %4 = vector.shape_cast %3 : vector<1x8x32xf32> to vector<8x32xf32>
    %c0_3 = arith.constant 0 : index
    %c0_4 = arith.constant 0 : index
    %5 = vector.load %arg5[%c0_3, %c0_4] : memref<32x128xf32, #tpu.memory_space<vmem>>, vector<32x128xf32>
    %cst = arith.constant dense<0.000000e+00> : vector<8x128xf32>
    %6 = tpu.matmul %4, %5, %cst {dimension_numbers = #tpu.dot_dimension_numbers<[1], [0], [0], [1], [0, 0, 1, 1], [], []>} : vector<8x32xf32>, vector<32x128xf32>, vector<8x128xf32> -> vector<8x128xf32>
    %c0_5 = arith.constant 0 : index
    %c0_6 = arith.constant 0 : index
    %7 = vector.load %arg9[%c0_5, %c0_6] : memref<8x128xf32, #tpu.memory_space<vmem>>, vector<8x128xf32>
    %cst_7 = arith.constant dense<0.000000e+00> : vector<8x8xf32>
    %8 = tpu.matmul %7, %6, %cst_7 {dimension_numbers = #tpu.dot_dimension_numbers<[1], [1], [0], [0], [0, 0, 1, 0], [], []>} : vector<8x128xf32>, vector<8x128xf32>, vector<8x8xf32> -> vector<8x8xf32>
    %c0_8 = arith.constant 0 : index
    %c0_9 = arith.constant 0 : index
    %9 = vector.load %arg10[%c0_8, %c0_9] : memref<8x1xf32, #tpu.memory_space<vmem>>, vector<8x1xf32>
    %c0_10 = arith.constant 0 : index
    %c0_11 = arith.constant 0 : index
    %c0_12 = arith.constant 0 : index
    %10 = vector.load %arg7[%c0_10, %c0_11, %c0_12] : memref<1x1x8xf32, #tpu.memory_space<vmem>>, vector<1x1x8xf32>
    %11 = vector.shape_cast %10 : vector<1x1x8xf32> to vector<1x8xf32>
    %12 = vector.broadcast %9 : vector<8x1xf32> to vector<8x8xf32>
    %13 = vector.broadcast %11 : vector<1x8xf32> to vector<8x8xf32>
    %14 = arith.addf %12, %13 : vector<8x8xf32>
    %cst_13 = arith.constant 2.000000e+00 : f32
    %15 = vector.broadcast %cst_13 : f32 to vector<8x8xf32>
    %16 = arith.mulf %15, %8 : vector<8x8xf32>
    %17 = arith.subf %14, %16 : vector<8x8xf32>
    %cst_14 = arith.constant 0.000000e+00 : f32
    %18 = vector.broadcast %cst_14 : f32 to vector<8x8xf32>
    %19 = arith.maximumf %17, %18 : vector<8x8xf32>
    %c0_15 = arith.constant 0 : index
    %c0_16 = arith.constant 0 : index
    %c0_17 = arith.constant 0 : index
    %20 = vector.load %arg8[%c0_15, %c0_16, %c0_17] : memref<1x8x1xf32, #tpu.memory_space<vmem>>, vector<1x8x1xf32>
    %21 = vector.shape_cast %20 : vector<1x8x1xf32> to vector<8x1xf32>
    %22 = arith.mulf %19, %19 : vector<8x8xf32>
    %cst_18 = arith.constant dense<0.000000e+00> : vector<8xf32>
    %23 = vector.multi_reduction <add>, %22, %cst_18 [1] : vector<8x8xf32> to vector<8xf32>
    %24 = vector.shape_cast %23 : vector<8xf32> to vector<8x1xf32>
    %25 = arith.addf %21, %24 : vector<8x1xf32>
    %c0_19 = arith.constant 0 : index
    %c0_20 = arith.constant 0 : index
    %c0_21 = arith.constant 0 : index
    %26 = vector.load %arg8[%c0_19, %c0_20, %c0_21] : memref<1x8x1xf32, #tpu.memory_space<vmem>>, vector<1x8x1xf32>
    %27 = vector.shape_cast %26 : vector<1x8x1xf32> to vector<8x1xf32>
    %28 = vector.shape_cast %25 : vector<8x1xf32> to vector<1x8x1xf32>
    tpu.vector_store %arg8[%c0_19, %c0_20, %c0_21], %28 {strides = array<i32>} : memref<1x8x1xf32, #tpu.memory_space<vmem>>, vector<1x8x1xf32>,
    return
  }
  func.func @transform_0(%arg0: i32, %arg1: i32, %arg2: i32) -> (i32, i32, i32) {
    %c0_i32 = arith.constant 0 : i32
    %c0_i32_0 = arith.constant 0 : i32
    return %arg0, %arg1, %c0_i32 : i32, i32, i32
  }
  func.func @transform_1(%arg0: i32, %arg1: i32, %arg2: i32) -> (i32, i32, i32) {
    %c0_i32 = arith.constant 0 : i32
    %c0_i32_0 = arith.constant 0 : i32
    return %arg0, %arg2, %c0_i32 : i32, i32, i32
  }
  func.func @transform_2(%arg0: i32, %arg1: i32, %arg2: i32) -> (i32, i32) {
    %c0_i32 = arith.constant 0 : i32
    %c0_i32_0 = arith.constant 0 : i32
    %c0_i32_1 = arith.constant 0 : i32
    return %c0_i32, %c0_i32_0 : i32, i32
  }
  func.func @transform_3(%arg0: i32, %arg1: i32, %arg2: i32) -> (i32, i32) {
    %c0_i32 = arith.constant 0 : i32
    %c0_i32_0 = arith.constant 0 : i32
    %c0_i32_1 = arith.constant 0 : i32
    return %c0_i32, %c0_i32_0 : i32, i32
  }
  func.func @transform_4(%arg0: i32, %arg1: i32, %arg2: i32) -> (i32, i32, i32) {
    %c0_i32 = arith.constant 0 : i32
    %c0_i32_0 = arith.constant 0 : i32
    return %arg0, %c0_i32, %arg2 : i32, i32, i32
  }
  func.func @transform_5(%arg0: i32, %arg1: i32, %arg2: i32) -> (i32, i32, i32) {
    %c0_i32 = arith.constant 0 : i32
    %c0_i32_0 = arith.constant 0 : i32
    return %arg0, %arg1, %c0_i32 : i32, i32, i32
  }
}

</mosaic_0001>

<bundles_post_ra>
// kernel: tpu_custom_call.1
= control target key start
LH: loop header
LB: loop body
LE: loop exit
PB: predicated region body
PF: predicated region fallthrough
CT: control target
= control target key end

     0   :  { %s1298_s0 = inlined_call_operand.hbm [shape: f32[2,8,32], index: 0, kind: input, shape index: {}]   ;;  %s1299_s1 = inlined_call_operand.hbm [shape: f32[2,8,32], index: 1, kind: input, shape index: {}]   ;;  %s1300_s2 = inlined_call_operand.hbm [shape: f32[32,128], index: 2, kind: input, shape index: {}]   ;;  %s1301_s3 = inlined_call_operand.vmem [shape: f32[1,128], index: 3, kind: input, shape index: {}]   ;;  %s1302_s4 = inlined_call_operand.vmem [shape: f32[2,1,8], index: 4, kind: input, shape index: {}]   ;;  %s1303_s5 = inlined_call_operand.vmem [shape: f32[2,8,1], index: 5, kind: output, shape index: {}]  }
   0x1   :  { %1309 = sst [smem:[#allocation12_spill]] %s1300_s2 }
   0x2   :  { %10 = vsyncpa [#allocation5], 0 }
   0x3   :  { %12 = vsyncpa [#allocation5 + $0x1], 0 }
   0x4   :  { %13 = vsyncpa [#allocation7], 0 }
   0x5   :  { %15 = vsyncpa [#allocation7 + $0x1], 0  ;;  %s1090_s18 = smov 0   ;;  %s1092_s19 = smov 0  }
   0x6   :  { %s1094_s20 = smov 0   ;;  %s1096_s21 = smov 0  }
   0x7   :  { %s1098_s22 = smov 0   ;;  %s1100_s23 = smov 0  }
   0x8 LB: > { %s1308_s24 = sadd.s32 4294967295, %s1049_s23   ;;  %p62_p0 = scmp.ne.s32.totalorder %s1033_s19, %s1029_s18  ;;  %s1049_s23 = sphi %s1100_s23, %s21_s23   ;;  %s1045_s22 = sphi %s1098_s22, %s1324_s22   ;;  %s1041_s21 = sphi %s1096_s21, %s1323_s21   ;;  %s1037_s20 = sphi %s1094_s20, %s1322_s20   ;;  %s1033_s19 = sphi %s1092_s19, %s1321_s19   ;;  %s1029_s18 = sphi %s1090_s18, %s1320_s18  }
   0x9   : > { %p1122_p1 = scmp.eq.s32.totalorder %s1308_s24, 0  ;;  %p756_p2 = scmp.ge.s32.totalorder %s1049_s23, 1 }
   0xa   : > { %p199_p3 = scmp.lt.s32.totalorder %s1049_s23, 3  ;;  %s1051_s28 = smov [#allocation8]  }
   0xb   : > { %s1310_s25 = scalar_select %p1122_p1, 1, 0 }
   0xc   : > { %p1130_p4 = por %p1122_p1, %p62_p0  ;;  %p1134_p5 = pnand %p756_p2, %p199_p3 }
   0xd   : > { %s211_s29 = sshll.u32 %s1051_s28, 4  ;;  %s40_s6 = sadd.s32 1, %s1045_s22  ;;  %s212_s29 = int_to_ptr.vmem [resolvable:$true] %s211_s29 }
   0xe   : > { %s1311_s26 = scalar_select %p1130_p4, 1, 0 }
   0xf   : > { %s1312_s27 = scalar_select %p1134_p5, 1, 0 }
  0x10   : > { %p833_p6 = pneg %p1134_p5  ;;  %s1314_s2 = sld [smem:[#allocation12_spill]] }
  0x12   : > { %p1142_p7 = pnand %p833_p6, %p1122_p1 }
  0x14   : > { %p905_p9 = pneg %p1142_p7 }
  0x16   : > { %s903_s9 = scalar_lea.hbm %s1314_s2, 512 }
  0x17   : > { %p904_p8 = scmp.ne.s32.totalorder %s1314_s2, %s903_s9  ;;  %p910_p12 = scmp.lt.u32.totalorder %s903_s9, %s1314_s2 }
  0x19   : > { %p906_p10 = pnand %p905_p9, %p904_p8 }
  0x1b   : > { %p907_p11 = pneg %p906_p10 }
  0x1d   : > { %p912_p13 = pnand %p910_p12, %p907_p11 }
  0x1f   : > { %915 = shalt.err (!%p912_p13)
}
  0x20   : > { %s916_s14 = scalar_lea.vmem %s212_s29, 512  ;;  %p924_p6 = scmp.lt.s32.totalorder %s212_s29, %s212_s29 }
  0x21   : > { %p917_p0 = scmp.ne.s32.totalorder %s212_s29, %s916_s14  ;;  %p925_p1 = scmp.lt.s32.totalorder %s916_s14, %s916_s14 }
  0x23   : > { %p919_p2 = pnand %p917_p0, %p905_p9  ;;  %p926_p4 = por %p925_p1, %p924_p6 }
  0x25   : > { %p920_p3 = pneg %p919_p2 }
  0x27   : > { %p927_p5 = pnand %p926_p4, %p920_p3 }
  0x29   : > { %930 = shalt.err (!%p927_p5)
}
  0x2a   : > { %s1052_s15 = smov 128   ;;  %s1053_s16 = smov 8  }
  0x2b   : > { %836 = dma.hbm_to_vmem [thread:$0]  (!%p1142_p7), %s1314_s2, 512, %s212_s29, [#allocation7], %s1052_s15, %s1052_s15, %s1053_s16  }
  0x2c   : > { %p42_p1 = scmp.ge.s32.totalorder %s40_s6, 2  ;;  %s49_s28 = sadd.s32 1, %s1037_s20 }
  0x2d   : > { %p56_p4 = scmp.ne.s32.totalorder %s1037_s20, %s1033_s19  ;;  %p57_p5 = scmp.eq.s32.totalorder %s1049_s23, 0 }
  0x2e   : > { %s1326_s6 = smov (%p42_p1, %s40_s6), 0  ;;  %p845_p9 = scmp.lt.s32.totalorder %s1049_s23, 2 }
  0x2f   : > { %p58_p8 = por %p57_p5, %p56_p4  ;;  %s44_s7 = ssub.s32 %s1045_s22, %s1326_s6 }
  0x30   : > { %s228_s8 = sand.u32 1, %s1037_s20   ;;  %p47_p10 = scmp.eq.s32.totalorder %s44_s7, 0 }
  0x31   : > { %s1173_s9 = sshll.u32 %s228_s8, 3  ;;  %s760_s30 = sshll.u32 %s1045_s22, 7 }
  0x32   : > { %s1177_s10 = scalar_select %p47_p10, %s1037_s20, %s49_s28  }
  0x33   : > { %s1182_s12 = scalar_lea.hbm %s1298_s0, %s760_s30  ;;  %s232_s13 = scalar_lea.vmem [#allocation4], %s1173_s9 }
  0x34   : > { %s240_s14 = sshll.u32 %s232_s13, 4  ;;  %p1185_p7 = pnand %p845_p9, %p58_p8  ;;  %s1189_s14 = int_to_ptr.vmem [resolvable:$true] %s240_s14 }
  0x35   : > { %s1194_s18 = scalar_lea.hbm %s1299_s1, %s760_s30  ;;  %s229_s28 = scalar_lea.sflag [#allocation5], %s228_s8 }
  0x36   : > { %s931_s7 = scalar_lea.hbm %s1182_s12, 128  ;;  %p933_p12 = pneg %p1185_p7 }
  0x37   : > { %p932_p11 = scmp.ne.s32.totalorder %s1182_s12, %s931_s7  ;;  %s936_s13 = scalar_lea.hbm %s1298_s0, 256 }
  0x38   : > { %p937_p2 = scmp.lt.u32.totalorder %s1182_s12, %s1298_s0  ;;  %p938_p3 = scmp.lt.u32.totalorder %s936_s13, %s931_s7 }
  0x39   : > { %p934_p13 = pnand %p933_p12, %p932_p11  ;;  %p940_p1 = scmp.lt.u32.totalorder %s931_s7, %s1182_s12 }
  0x3a   : > { %p939_p6 = por %p938_p3, %p937_p2 }
  0x3b   : > { %p935_p0 = pneg %p934_p13 }
  0x3c   : > { %p941_p4 = por %p940_p1, %p939_p6 }
  0x3e   : > { %p942_p5 = pnand %p941_p4, %p935_p0 }
  0x40   : > { %945 = shalt.err (!%p942_p5)
}
  0x41   : > { %s946_s8 = scalar_lea.vmem %s1189_s14, 128  ;;  %s1054_s30 = smov [#allocation4]  }
  0x42   : > { %p947_p8 = scmp.ne.s32.totalorder %s1189_s14, %s946_s8  ;;  %s951_s16 = sshll.u32 %s1054_s30, 4  ;;  %s952_s16 = int_to_ptr.vmem [resolvable:$false] %s951_s16 }
  0x43   : > { %s953_s2 = scalar_lea.vmem %s952_s16, 256  ;;  %p954_p11 = scmp.lt.s32.totalorder %s1189_s14, %s952_s16 }
  0x44   : > { %p949_p9 = pnand %p947_p8, %p933_p12  ;;  %p955_p13 = scmp.lt.s32.totalorder %s953_s2, %s946_s8 }
  0x46   : > { %p950_p10 = pneg %p949_p9  ;;  %p956_p2 = por %p955_p13, %p954_p11 }
  0x48   : > { %p957_p3 = pnand %p956_p2, %p950_p10 }
  0x4a   : > { %960 = shalt.err (!%p957_p3)
}
  0x4b   : > { %840 = dma.hbm_to_vmem [thread:$0]  (!%p1185_p7), %s1182_s12, 128, %s1189_s14, %s229_s28  }
  0x4c   : > { %s247_s24 = sand.u32 1, %s1049_s23   ;;  %s251_s17 = scalar_lea.vmem [#allocation6], %s1173_s9 }
  0x4d   : > { %s259_s7 = sshll.u32 %s251_s17, 4  ;;  %s248_s11 = scalar_lea.sflag [#allocation7], %s247_s24  ;;  %s260_s7 = int_to_ptr.vmem [resolvable:$true] %s259_s7 }
  0x4e   : > { %s961_s29 = scalar_lea.hbm %s1194_s18, 128  ;;  %s966_s30 = scalar_lea.hbm %s1299_s1, 256 }
  0x4f   : > { %p962_p0 = scmp.ne.s32.totalorder %s1194_s18, %s961_s29  ;;  %p967_p4 = scmp.lt.u32.totalorder %s1194_s18, %s1299_s1 }
  0x50   : > { %p968_p5 = scmp.lt.u32.totalorder %s966_s30, %s961_s29  ;;  %p970_p9 = scmp.lt.u32.totalorder %s961_s29, %s1194_s18 }
  0x51   : > { %p964_p6 = pnand %p962_p0, %p933_p12 }
  0x52   : > { %p969_p8 = por %p968_p5, %p967_p4 }
  0x53   : > { %p965_p1 = pneg %p964_p6 }
  0x54   : > { %p971_p10 = por %p970_p9, %p969_p8 }
  0x56   : > { %p972_p11 = pnand %p971_p10, %p965_p1 }
  0x58   : > { %975 = shalt.err (!%p972_p11)
}
  0x59   : > { %s976_s9 = scalar_lea.vmem %s260_s7, 128  ;;  %s1055_s12 = smov [#allocation6]  }
  0x5a   : > { %p977_p13 = scmp.ne.s32.totalorder %s260_s7, %s976_s9  ;;  %s981_s14 = sshll.u32 %s1055_s12, 4  ;;  %s982_s14 = int_to_ptr.vmem [resolvable:$false] %s981_s14 }
  0x5b   : > { %s983_s28 = scalar_lea.vmem %s982_s14, 256  ;;  %p984_p0 = scmp.lt.s32.totalorder %s260_s7, %s982_s14 }
  0x5c   : > { %p979_p2 = pnand %p977_p13, %p933_p12  ;;  %p985_p6 = scmp.lt.s32.totalorder %s983_s28, %s976_s9 }
  0x5e   : > { %p980_p3 = pneg %p979_p2  ;;  %p986_p4 = por %p985_p6, %p984_p0 }
  0x60   : > { %p987_p5 = pnand %p986_p4, %p980_p3 }
  0x62   : > { %990 = shalt.err (!%p987_p5)
}
  0x63   : > { %843 = dma.hbm_to_vmem [thread:$0]  (!%p1185_p7), %s1194_s18, 128, %s260_s7, %s248_s11  }
  0x64   : > { %p1316_p1 = scmp.ne.s32.totalorder %s1312_s27, 0 }
  0x65   : > { %s279_s24 = sand.u32 (!%p1316_p1), 1, %s1033_s19   ;;  %p1317_p12 = scmp.ne.s32.totalorder (!%p1316_p1), %s1311_s26, 0 }
  0x66   : > { %277 = sbr.rel (%p1316_p1) target bundleno = 776 (0x308), region = 40  ;;  %s1245_s17 = sshll.u32 (!%p1316_p1), %s279_s24, 3 }
  0x67   : > { %s280_s29 = scalar_lea.sflag (!%p1316_p1), [#allocation5], %s279_s24  ;;  %s283_s13 = scalar_lea.vmem (!%p1316_p1), [#allocation4], %s1245_s17 }
  0x6d   : > { %1016 = dma.done.wait (%p1317_p12), %s280_s29, 128  }
  0x6e   : > { %1018 = vsyncadd (%p1317_p12), %s280_s29, 4294967168  ;;  %s1318_s15 = sadd.s32 4294967295, %s1049_s23   ;;  %s292_s7 = scalar_lea.vmem [#allocation6], %s1245_s17 }
  0x6f   : > { %s288_s18 = sand.u32 1, %s1318_s15  }
  0x70   : > { %s289_s27 = scalar_lea.sflag [#allocation7], %s288_s18 }
  0x71   : > { %1020 = dma.done.wait (%p1317_p12), %s289_s27, 128  }
  0x72   : > { %1022 = vsyncadd (%p1317_p12), %s289_s27, 4294967168  ;;  %p1319_p7 = scmp.ne.s32.totalorder %s1310_s25, 0 }
  0x74   : > { %1024 = dma.done.wait (%p1319_p7), [#allocation7], 512  }
  0x75   : > { %1026 = vsyncadd (%p1319_p7), [#allocation7], 4294966784  ;;  %v1056_v0 = vmov 0.0|0.0   ;;  %vm1057_vm0 = vmmov 0   ;;  %v1058_v1 = vmov 0.0   ;;  %v354_v2 = vld [vmem:[#allocation8] sm:$0xff] }
  0x76   : > { %813 = vmatprep.subr.bf16.mxu0 %v1056_v0  ;;  %819 = vmatprep.subr.bf16.mxu1 %v1056_v0  ;;  %v355_v3 = vld [vmem:[#allocation8 + $0x8] sm:$0xff]  ;;  %v356_v4 = vld [vmem:[#allocation8 + $0x10] sm:$0xff]  ;;  %v357_v6 = vld [vmem:[#allocation8 + $0x18] sm:$0xff]  ;;  %vm365_vm1 = vcmask 261120   ;;  %v1059_v17 = vmov 0   ;;  %vm443_vm2 = vcmask 7168  }
  0x77   : > { %794 = vmatprep.mubr.msk.f32.mxu0 %vm1057_vm0, %v1058_v1  ;;  %805 = vmatprep.mubr.msk.f32.mxu1 %vm1057_vm0, %v1058_v1  ;;  %v814_v5 = vpack.c.bf16 %v355_v3, %v354_v2  ;;  %v817_v7 = vpack.c.bf16 %v357_v6, %v356_v4  ;;  %v353_v8 = vld [vmem:[%s283_s13] sm:$0xff]  ;;  %v446_v9 = vld [vmem:[%s292_s7] sm:$0xff]  ;;  %p336_p8 = scmp.lt.s32.totalorder %s1041_s21, 1  ;;  %vm615_vm3 = vcmask 64512  }
  0x78   : > { %v768_v10 = vld [vmem:[%s1301_s3] ss:$0 sm:$0xff]  ;;  %902 = vset.pattern.permute.xlu0 %v1059_v17 }
  0x79   : > { %815 = vmatpush3.bf16.msra.mxu0 %v814_v5  ;;  %821 = vmatpush3.bf16.msra.mxu1 %v814_v5  ;;  %s1328_s21 = smov (!%p336_p8, %s1041_s21), 1 }
  0x7a   : > { %816 = vmatprep.subr.bf16.mxu0 %v1056_v0  ;;  %822 = vmatprep.subr.bf16.mxu1 %v1056_v0  ;;  %s767_s11 = sshll.u32 %s1328_s21, 3  ;;  %s341_s12 = scalar_lea.vmem %s1302_s4, %s1328_s21 }
  0x7b   : > { %s348_s16 = scalar_lea.vmem %s1303_s5, %s767_s11  ;;  %v771_v22 = vld [vmem:[%s341_s12] ss:$0 sm:$0xff] }
  0x7c   : > { %445 = vst.msk [vmem:[%s348_s16] sm:$0xff] %vm443_vm2, %v1058_v1 }
  0x7d   : > { %818 = vmatpush3.bf16.msra.mxu0 %v817_v7  ;;  %824 = vmatpush3.bf16.msra.mxu1 %v817_v7 }
  0x7e   : > { %808 = vmatprep.subr.mxu0 %v1058_v1 }
  0x80   : > { %795 = vmatmul.mubr.msk.f32.vlgmr.msra.gmra.mrb[0].mxu0 %vm365_vm1, %v353_v8  ;;  %806 = vmatmul.mubr.msk.f32.vlgmr.msra.gmra.mrb[0].mxu1 %vm365_vm1, %v446_v9 }
  0x81   : > { %810 = vmatprep.mubr.msk.f32.mxu0 %vm1057_vm0, %v1058_v1 }
  0x83   : > { %v613_v30 = vld [vmem:[%s348_s16] sm:$0xff] }
 0x153   : > { %v435_v11 = vpop.f32.mrb[0].mxu0  ;;  %v521_v12 = vpop.f32.mrb[0].mxu1 }
 0x154   : > { %v436_v13 = vadd.f32 %v768_v10, %v435_v11  ;;  %v796_v14 = vpop.f32.mrb[1].mxu0  ;;  %809 = vmatpush3.xpose.msra.mxu0 %v521_v12  ;;  %v807_v15 = vpop.f32.mrb[1].mxu1 }
 0x156   : > { %v440_v16 = vmul.f32 %v436_v13, %v436_v13 }
 0x157   : > { %811 = vmatmul.mubr.f32.vlgmr.msra.gmra.mrb[2].mxu0 %v436_v13 }
 0x158   : > { %441 = vadd.xlane.f32.xlu0 %v440_v16 }
 0x1e5   : > { %v442_v18 = vpop.xlane.xlu0 %441 }
 0x1e6   : > { %444 = vst.msk [vmem:[#allocation3] sm:$0xff] %vm443_vm2, %v442_v18 }
 0x1ed   : > { %v596_v19 = vld [vmem:[#allocation3] sm:$0xff] }
 0x1ee   : > { %600 = vperm.xlu0 %902, %v596_v19  }
 0x22a   : > { %v592_v20 = vpop.f32.mrb[2].mxu0 }
 0x22b   : > { %v812_v21 = vpop.f32.mrb[3].mxu0  ;;  %v610_v24 = vmul.f32 2.0, %v592_v20 }
 0x26d   : > { %v601_v23 = vpop.permute.xlu0 %600 }
 0x26e   : > { %v609_v25 = vadd.f32 %v771_v22, %v601_v23 }
 0x270   : > { %v611_v26 = vsub.f32 %v609_v25, %v610_v24 }
 0x272   : > { %v612_v27 = vmax.f32 %v611_v26, 0.0 }
 0x274   : > { %v614_v28 = vmul.f32 %v612_v27, %v612_v27 }
 0x276   : > { %v616_v29 = vsel %vm615_vm3, %v614_v28, 0.0 }
 0x277   : > { %617 = vadd.xlane.f32.xlu1 %v616_v29 }
 0x304   : > { %v618_v31 = vpop.xlane.xlu1 %617 }
 0x305   : > { %v619_v32 = vadd.f32 %v618_v31, %v613_v30 }
 0x307   : > { %621 = vst.msk [vmem:[%s348_s16] sm:$0xff] %vm443_vm2, %v619_v32 }
 0x308 PF: > { %s21_s23 = sadd.s32 1, %s1049_s23   ;;  %s1320_s18 = smov %s1033_s19 }
 0x309   : > { %p18_p9 = scmp.ge.s32.totalorder %s21_s23, 4   ;;  %s1321_s19 = smov %s1037_s20 }
 0x30a   : > { %s1322_s20 = smov %s1177_s10  ;;  %s1323_s21 = smov %s1045_s22 }
 0x30b   : > { %s1324_s22 = smov %s1326_s6  ;;  %20 = sbr.rel (!%p18_p9) target bundleno = 8 (0x8), region = 104 }
 0x312   :  { %647 = vsyncpa [#allocation5], 1 }
 0x313   :  { %649 = vsyncpa [#allocation5 + $0x1], 1 }
 0x314   :  { %650 = vsyncpa [#allocation7], 1 }
 0x315   :  { %652 = vsyncpa [#allocation7 + $0x1], 1 }

</bundles_post_ra>
